<compile_context>
chip_gen: v5e
topology: v5e:2x2
jax: 0.10.0
libtpu: 0.0.40
codegen_flags: <defaults>
</compile_context>

<pallas_src>
import functools
import math

import numpy as np

import jax
import jax.numpy as jnp
from jax.experimental import pallas as pl
from jax.experimental.pallas import tpu as pltpu


# ---------------------------------------------------------------------------
# Fused consistency-sampling kernel (all T steps for one lane tile)
# ---------------------------------------------------------------------------
def lcm_fused_kernel(coef_ref, bias_ref, wm_ref, x_ref, z_ref, out_ref, xs_ref,
                     *, batch, channels):
    """Grid: (lane_tiles, T); axis 0 "parallel", axis 1 ("arbitrary") is time.

    coef_ref : (T, 6) f32 SMEM per-step scheduler scalars
               [c_skip, c_out, 1/sqrt(a_t), sqrt(1-a_t), sqrt(a_prev), sqrt(1-a_prev)]
    bias_ref : (T, C) f32 SMEM  synthetic epsilon-model time/guidance bias
    wm_ref   : (C, C) f32 SMEM  synthetic epsilon-model 1x1-conv channel mix
    x_ref    : (B*C, LT) f32 VMEM  initial noisy sample (read once at t == 0)
    z_ref    : (1, B*C, LT) f32 VMEM  this step's Gaussian noise
    out_ref  : (B*C, LT) f32 VMEM  denormalized image (written at t == T-1)
    xs_ref   : (B*C, LT) f32 VMEM scratch  evolving sample, resident across t
    """
    t = pl.program_id(1)
    n_t = pl.num_programs(1)

    @pl.when(t == 0)
    def _init():
        xs_ref[...] = x_ref[...]

    c_skip = coef_ref[t, 0]
    c_out = coef_ref[t, 1]
    inv_sqrt_alpha = coef_ref[t, 2]
    sqrt_beta = coef_ref[t, 3]
    sqrt_alpha_prev = coef_ref[t, 4]
    sqrt_beta_prev = coef_ref[t, 5]

    xs = xs_ref[...]                                       # (B*C, LT)

    # Synthetic epsilon_theta(x_t, t, w_emb): per-batch 1x1-conv channel mix plus
    # a time/guidance bias, unrolled as VPU scalar*vector FMAs (off the MXU).
    # TODO(synk): the real model is an external conditional UNet
    #             model(x_t, t, c1, c2, timestep_cond=w_embedding); the c1/c2
    #             class conditions have no counterpart in this stand-in.
    eps_rows = []
    for b in range(batch):
        x_rows = [xs_ref[b * channels + k:b * channels + k + 1, :]
                  for k in range(channels)]                # each (1, LT)
        for c in range(channels):
            acc = wm_ref[c, 0] * x_rows[0]
            for k in range(1, channels):
                acc = acc + wm_ref[c, k] * x_rows[k]
            eps_rows.append(acc + bias_ref[t, c])
    eps = jnp.concatenate(eps_rows, axis=0)                # (B*C, LT)

    # LCMScheduler.step (prediction_type="epsilon", clip_sample=True)
    x0 = jnp.clip((xs - sqrt_beta * eps) * inv_sqrt_alpha, -1.0, 1.0)
    denoised = c_out * x0 + c_skip * xs
    # prev_sample = sqrt(a_prev)*denoised + sqrt(1-a_prev)*noise; at the final
    # step the host sets sqrt_alpha_prev=1 / sqrt_beta_prev=0 so state==denoised.
    new_xs = sqrt_alpha_prev * denoised + sqrt_beta_prev * z_ref[0]
    xs_ref[...] = new_xs

    @pl.when(t == n_t - 1)
    def _finalize():
        # image = denormalize(denoised) = clamp(denoised / 2 + 0.5, 0, 1)
        out_ref[...] = jnp.clip(new_xs * 0.5 + 0.5, 0.0, 1.0)


# ---------------------------------------------------------------------------
# One fused pallas_call running the whole T-step loop (jitted)
# ---------------------------------------------------------------------------
@jax.jit
def consistency_sample(x_t, z_all, coefs, bias_tbl, wm):
    B, C, H, W = x_t.shape
    HW = H * W
    BC = B * C
    T = z_all.shape[0]
    lane_tile = 128 if HW % 128 == 0 else HW               # 2-way lane split at HW=256
    n_lane = HW // lane_tile

    x2 = x_t.reshape(BC, HW).astype(jnp.float32)
    z2 = z_all.reshape(T, BC, HW).astype(jnp.float32)

    smem = pl.BlockSpec(memory_space=pltpu.MemorySpace.SMEM)
    kernel = functools.partial(lcm_fused_kernel, batch=B, channels=C)
    out = pl.pallas_call(
        kernel,
        out_shape=jax.ShapeDtypeStruct((BC, HW), jnp.float32),
        grid=(n_lane, T),
        in_specs=[
            smem,                                                       # (T, 6) coef table
            smem,                                                       # (T, C) bias table
            smem,                                                       # (C, C) channel mix
            pl.BlockSpec((BC, lane_tile), lambda l, t: (0, l)),         # initial x
            pl.BlockSpec((1, BC, lane_tile), lambda l, t: (t, 0, l)),   # per-step noise
        ],
        out_specs=pl.BlockSpec((BC, lane_tile), lambda l, t: (0, l)),
        scratch_shapes=[pltpu.VMEM((BC, lane_tile), jnp.float32)],
        compiler_params=pltpu.CompilerParams(
            dimension_semantics=("parallel", "arbitrary")),
    )(coefs, bias_tbl, wm, x2, z2)
    return out.reshape(B, C, H, W)


# ---------------------------------------------------------------------------
# Host-side scheduler / embedding glue (mirrors LCMScheduler + the module)
# ---------------------------------------------------------------------------
def make_lcm_schedule(num_inference_steps, *, num_train_timesteps=1000,
                      original_inference_steps=50, beta_start=0.00085,
                      beta_end=0.012, beta_schedule="scaled_linear",
                      timestep_scaling=10.0, sigma_data=0.5):
    """LCMScheduler.set_timesteps + the per-step scalars used by .step()."""
    if beta_schedule == "linear":
        betas = np.linspace(beta_start, beta_end, num_train_timesteps, dtype=np.float64)
    elif beta_schedule == "scaled_linear":
        betas = np.linspace(beta_start ** 0.5, beta_end ** 0.5,
                            num_train_timesteps, dtype=np.float64) ** 2
    else:
        raise ValueError(f"Unsupported beta_schedule: {beta_schedule}")
    alphas_cumprod = np.cumprod(1.0 - betas)

    k = num_train_timesteps // original_inference_steps
    lcm_origin = np.asarray(range(1, original_inference_steps + 1)) * k - 1
    lcm_origin = lcm_origin[::-1].copy()
    idx = np.floor(np.linspace(0, len(lcm_origin), num_inference_steps,
                               endpoint=False)).astype(np.int64)
    timesteps = lcm_origin[idx]                            # descending

    coefs = np.zeros((num_inference_steps, 6), np.float32)
    for i, t in enumerate(timesteps):
        a_t = alphas_cumprod[t]
        st = timestep_scaling * float(t)
        c_skip = sigma_data ** 2 / (st ** 2 + sigma_data ** 2)
        c_out = st / math.sqrt(st ** 2 + sigma_data ** 2)
        if i < num_inference_steps - 1:
            a_prev = alphas_cumprod[timesteps[i + 1]]
            sa_prev, sb_prev = math.sqrt(a_prev), math.sqrt(1.0 - a_prev)
        else:
            sa_prev, sb_prev = 1.0, 0.0                    # last step: prev = denoised
        coefs[i] = [c_skip, c_out, 1.0 / math.sqrt(a_t), math.sqrt(1.0 - a_t),
                    sa_prev, sb_prev]
    return timesteps, coefs


def get_guidance_scale_embedding(w, embedding_dim=256):
    """ConsisctencySampler.get_guidance_scale_embedding (one-time host glue)."""
    w = np.asarray(w, np.float32) * 1000.0
    half_dim = embedding_dim // 2
    emb = math.log(10000.0) / (half_dim - 1)
    emb = np.exp(np.arange(half_dim, dtype=np.float32) * -emb)
    emb = w[:, None] * emb[None, :]
    emb = np.concatenate([np.sin(emb), np.cos(emb)], axis=1)
    if embedding_dim % 2 == 1:
        emb = np.pad(emb, ((0, 0), (0, 1)))
    return emb                                             # (len(w), embedding_dim)


def consistency_sampler_forward(x_t, wm, wproj, key, *, num_inference_steps=4,
                                guidance_scale=3.5, time_cond_proj_dim=32):
    """ConsisctencySampler.forward: one fused Pallas sampling call on TPU."""
    B, C, H, W = x_t.shape
    timesteps, coefs = make_lcm_schedule(num_inference_steps)

    # guidance-scale embedding (identical across the batch: w = scale-1 repeated),
    # projected to a per-channel bias of the synthetic epsilon model
    w = np.full((B,), guidance_scale - 1.0, np.float32)
    w_emb = get_guidance_scale_embedding(w, embedding_dim=time_cond_proj_dim)
    w_bias = np.asarray(wproj, np.float32) @ w_emb[0]      # (C,)

    t_f = timesteps.astype(np.float32)
    bias_tbl = (0.1 * np.sin(0.3 * t_f[:, None]
                             + np.arange(C, dtype=np.float32)[None, :])
                + w_bias[None, :]).astype(np.float32)

    # pre-generate all step noises once; the final step's noise is unused
    # (its coefficient is 0) but zero it to mirror the reference exactly
    z = jax.random.normal(key, (num_inference_steps, B, C, H * W), jnp.float32)
    z = z.at[num_inference_steps - 1].set(0.0)

    return consistency_sample(x_t, z, jnp.asarray(coefs),
                              jnp.asarray(bias_tbl), jnp.asarray(wm, jnp.float32))


if __name__ == "__main__":
    key = jax.random.PRNGKey(0)
    # TODO(synk): the real module uses x_shape = (n_samples, 3, img, img); C=4 here
    #             keeps B*C = 8 sublane-dense at the small example size.
    B, C, H, W = 2, 4, 16, 16
    num_inference_steps = 4
    time_cond_proj_dim = 32

    k_x, k_w, k_p, k_noise = jax.random.split(key, 4)
    x_t = jax.random.normal(k_x, (B, C, H, W), dtype=jnp.float32)
    # deterministic synthetic epsilon-model parameters
    wm = 0.1 * jax.random.normal(k_w, (C, C), dtype=jnp.float32)
    wproj = 0.02 * jax.random.normal(k_p, (C, time_cond_proj_dim), dtype=jnp.float32)

    img = consistency_sampler_forward(
        x_t, wm, wproj, k_noise,
        num_inference_steps=num_inference_steps,
        guidance_scale=3.5,
        time_cond_proj_dim=time_cond_proj_dim)
    img = jax.block_until_ready(img)

    assert img.shape == (B, C, H, W) and img.dtype == jnp.float32
    assert bool(jnp.all(jnp.isfinite(img)))
    assert bool(jnp.all(img >= 0.0) & jnp.all(img <= 1.0))   # denormalize clamps to [0,1]
    print("KERNEL_OK")
</pallas_src>

<mosaic_0001>
module attributes {stable_mosaic.version = 11 : i64} {
  func.func @lcm_fused_kernel(%arg0: i32, %arg1: i32, %arg2: memref<4x6xf32, #tpu.memory_space<smem>>, %arg3: memref<4x4xf32, #tpu.memory_space<smem>>, %arg4: memref<4x4xf32, #tpu.memory_space<smem>>, %arg5: memref<8x128xf32, #tpu.memory_space<vmem>>, %arg6: memref<1x8x128xf32, #tpu.memory_space<vmem>>, %arg7: memref<8x128xf32, #tpu.memory_space<vmem>>, %arg8: memref<8x128xf32, #tpu.memory_space<vmem>>) attributes {dimension_semantics = [#tpu.dimension_semantics<parallel>, #tpu.dimension_semantics<arbitrary>], iteration_bounds = array<i64: 2, 4>, scalar_prefetch = 0 : i64, scratch_operands = 1 : i64, tpu.core_type = #tpu.core_type<tc>, window_params = [{transform_indices = @transform_0, window_bounds = array<i64: 4, 6>}, {transform_indices = @transform_1, window_bounds = array<i64: 4, 4>}, {transform_indices = @transform_2, window_bounds = array<i64: 4, 4>}, {transform_indices = @transform_3, window_bounds = array<i64: 8, 128>}, {transform_indices = @transform_4, window_bounds = array<i64: 1, 8, 128>}, {transform_indices = @transform_5, window_bounds = array<i64: 8, 128>}]} {
    %c0_i32 = arith.constant 0 : i32
    %0 = arith.cmpi eq, %arg1, %c0_i32 : i32
    %1 = arith.extui %0 : i1 to i32
    %c0_i32_0 = arith.constant 0 : i32
    %2 = arith.cmpi ne, %1, %c0_i32_0 : i32
    scf.if %2 {
      %c0_96 = arith.constant 0 : index
      %c0_97 = arith.constant 0 : index
      %202 = vector.load %arg5[%c0_96, %c0_97] : memref<8x128xf32, #tpu.memory_space<vmem>>, vector<8x128xf32>
      %c0_98 = arith.constant 0 : index
      %c0_99 = arith.constant 0 : index
      %203 = vector.load %arg8[%c0_98, %c0_99] : memref<8x128xf32, #tpu.memory_space<vmem>>, vector<8x128xf32>
      tpu.vector_store %arg8[%c0_98, %c0_99], %202 {strides = array<i32>} : memref<8x128xf32, #tpu.memory_space<vmem>>, vector<8x128xf32>,
    } else {
    }
    %3 = arith.index_cast %arg1 : i32 to index
    %c0 = arith.constant 0 : index
    %4 = memref.load %arg2[%3, %c0] : memref<4x6xf32, #tpu.memory_space<smem>>
    %5 = arith.index_cast %arg1 : i32 to index
    %c1 = arith.constant 1 : index
    %6 = memref.load %arg2[%5, %c1] : memref<4x6xf32, #tpu.memory_space<smem>>
    %7 = arith.index_cast %arg1 : i32 to index
    %c2 = arith.constant 2 : index
    %8 = memref.load %arg2[%7, %c2] : memref<4x6xf32, #tpu.memory_space<smem>>
    %9 = arith.index_cast %arg1 : i32 to index
    %c3 = arith.constant 3 : index
    %10 = memref.load %arg2[%9, %c3] : memref<4x6xf32, #tpu.memory_space<smem>>
    %11 = arith.index_cast %arg1 : i32 to index
    %c4 = arith.constant 4 : index
    %12 = memref.load %arg2[%11, %c4] : memref<4x6xf32, #tpu.memory_space<smem>>
    %13 = arith.index_cast %arg1 : i32 to index
    %c5 = arith.constant 5 : index
    %14 = memref.load %arg2[%13, %c5] : memref<4x6xf32, #tpu.memory_space<smem>>
    %c0_1 = arith.constant 0 : index
    %c0_2 = arith.constant 0 : index
    %15 = vector.load %arg8[%c0_1, %c0_2] : memref<8x128xf32, #tpu.memory_space<vmem>>, vector<8x128xf32>
    %c0_3 = arith.constant 0 : index
    %c0_4 = arith.constant 0 : index
    %16 = vector.load %arg8[%c0_3, %c0_4] : memref<8x128xf32, #tpu.memory_space<vmem>>, vector<1x128xf32>
    %c1_5 = arith.constant 1 : index
    %c0_6 = arith.constant 0 : index
    %17 = vector.load %arg8[%c1_5, %c0_6] : memref<8x128xf32, #tpu.memory_space<vmem>>, vector<1x128xf32>
    %c2_7 = arith.constant 2 : index
    %c0_8 = arith.constant 0 : index
    %18 = vector.load %arg8[%c2_7, %c0_8] : memref<8x128xf32, #tpu.memory_space<vmem>>, vector<1x128xf32>
    %c3_9 = arith.constant 3 : index
    %c0_10 = arith.constant 0 : index
    %19 = vector.load %arg8[%c3_9, %c0_10] : memref<8x128xf32, #tpu.memory_space<vmem>>, vector<1x128xf32>
    %c0_11 = arith.constant 0 : index
    %c0_12 = arith.constant 0 : index
    %20 = memref.load %arg4[%c0_11, %c0_12] : memref<4x4xf32, #tpu.memory_space<smem>>
    %21 = vector.broadcast %20 : f32 to vector<1x128xf32>
    %22 = arith.mulf %21, %16 : vector<1x128xf32>
    %c0_13 = arith.constant 0 : index
    %c1_14 = arith.constant 1 : index
    %23 = memref.load %arg4[%c0_13, %c1_14] : memref<4x4xf32, #tpu.memory_space<smem>>
    %24 = vector.broadcast %23 : f32 to vector<1x128xf32>
    %25 = arith.mulf %24, %17 : vector<1x128xf32>
    %26 = arith.addf %22, %25 : vector<1x128xf32>
    %c0_15 = arith.constant 0 : index
    %c2_16 = arith.constant 2 : index
    %27 = memref.load %arg4[%c0_15, %c2_16] : memref<4x4xf32, #tpu.memory_space<smem>>
    %28 = vector.broadcast %27 : f32 to vector<1x128xf32>
    %29 = arith.mulf %28, %18 : vector<1x128xf32>
    %30 = arith.addf %26, %29 : vector<1x128xf32>
    %c0_17 = arith.constant 0 : index
    %c3_18 = arith.constant 3 : index
    %31 = memref.load %arg4[%c0_17, %c3_18] : memref<4x4xf32, #tpu.memory_space<smem>>
    %32 = vector.broadcast %31 : f32 to vector<1x128xf32>
    %33 = arith.mulf %32, %19 : vector<1x128xf32>
    %34 = arith.addf %30, %33 : vector<1x128xf32>
    %35 = arith.index_cast %arg1 : i32 to index
    %c0_19 = arith.constant 0 : index
    %36 = memref.load %arg3[%35, %c0_19] : memref<4x4xf32, #tpu.memory_space<smem>>
    %37 = vector.broadcast %36 : f32 to vector<1x128xf32>
    %38 = arith.addf %34, %37 : vector<1x128xf32>
    %c1_20 = arith.constant 1 : index
    %c0_21 = arith.constant 0 : index
    %39 = memref.load %arg4[%c1_20, %c0_21] : memref<4x4xf32, #tpu.memory_space<smem>>
    %40 = vector.broadcast %39 : f32 to vector<1x128xf32>
    %41 = arith.mulf %40, %16 : vector<1x128xf32>
    %c1_22 = arith.constant 1 : index
    %c1_23 = arith.constant 1 : index
    %42 = memref.load %arg4[%c1_22, %c1_23] : memref<4x4xf32, #tpu.memory_space<smem>>
    %43 = vector.broadcast %42 : f32 to vector<1x128xf32>
    %44 = arith.mulf %43, %17 : vector<1x128xf32>
    %45 = arith.addf %41, %44 : vector<1x128xf32>
    %c1_24 = arith.constant 1 : index
    %c2_25 = arith.constant 2 : index
    %46 = memref.load %arg4[%c1_24, %c2_25] : memref<4x4xf32, #tpu.memory_space<smem>>
    %47 = vector.broadcast %46 : f32 to vector<1x128xf32>
    %48 = arith.mulf %47, %18 : vector<1x128xf32>
    %49 = arith.addf %45, %48 : vector<1x128xf32>
    %c1_26 = arith.constant 1 : index
    %c3_27 = arith.constant 3 : index
    %50 = memref.load %arg4[%c1_26, %c3_27] : memref<4x4xf32, #tpu.memory_space<smem>>
    %51 = vector.broadcast %50 : f32 to vector<1x128xf32>
    %52 = arith.mulf %51, %19 : vector<1x128xf32>
    %53 = arith.addf %49, %52 : vector<1x128xf32>
    %54 = arith.index_cast %arg1 : i32 to index
    %c1_28 = arith.constant 1 : index
    %55 = memref.load %arg3[%54, %c1_28] : memref<4x4xf32, #tpu.memory_space<smem>>
    %56 = vector.broadcast %55 : f32 to vector<1x128xf32>
    %57 = arith.addf %53, %56 : vector<1x128xf32>
    %c2_29 = arith.constant 2 : index
    %c0_30 = arith.constant 0 : index
    %58 = memref.load %arg4[%c2_29, %c0_30] : memref<4x4xf32, #tpu.memory_space<smem>>
    %59 = vector.broadcast %58 : f32 to vector<1x128xf32>
    %60 = arith.mulf %59, %16 : vector<1x128xf32>
    %c2_31 = arith.constant 2 : index
    %c1_32 = arith.constant 1 : index
    %61 = memref.load %arg4[%c2_31, %c1_32] : memref<4x4xf32, #tpu.memory_space<smem>>
    %62 = vector.broadcast %61 : f32 to vector<1x128xf32>
    %63 = arith.mulf %62, %17 : vector<1x128xf32>
    %64 = arith.addf %60, %63 : vector<1x128xf32>
    %c2_33 = arith.constant 2 : index
    %c2_34 = arith.constant 2 : index
    %65 = memref.load %arg4[%c2_33, %c2_34] : memref<4x4xf32, #tpu.memory_space<smem>>
    %66 = vector.broadcast %65 : f32 to vector<1x128xf32>
    %67 = arith.mulf %66, %18 : vector<1x128xf32>
    %68 = arith.addf %64, %67 : vector<1x128xf32>
    %c2_35 = arith.constant 2 : index
    %c3_36 = arith.constant 3 : index
    %69 = memref.load %arg4[%c2_35, %c3_36] : memref<4x4xf32, #tpu.memory_space<smem>>
    %70 = vector.broadcast %69 : f32 to vector<1x128xf32>
    %71 = arith.mulf %70, %19 : vector<1x128xf32>
    %72 = arith.addf %68, %71 : vector<1x128xf32>
    %73 = arith.index_cast %arg1 : i32 to index
    %c2_37 = arith.constant 2 : index
    %74 = memref.load %arg3[%73, %c2_37] : memref<4x4xf32, #tpu.memory_space<smem>>
    %75 = vector.broadcast %74 : f32 to vector<1x128xf32>
    %76 = arith.addf %72, %75 : vector<1x128xf32>
    %c3_38 = arith.constant 3 : index
    %c0_39 = arith.constant 0 : index
    %77 = memref.load %arg4[%c3_38, %c0_39] : memref<4x4xf32, #tpu.memory_space<smem>>
    %78 = vector.broadcast %77 : f32 to vector<1x128xf32>
    %79 = arith.mulf %78, %16 : vector<1x128xf32>
    %c3_40 = arith.constant 3 : index
    %c1_41 = arith.constant 1 : index
    %80 = memref.load %arg4[%c3_40, %c1_41] : memref<4x4xf32, #tpu.memory_space<smem>>
    %81 = vector.broadcast %80 : f32 to vector<1x128xf32>
    %82 = arith.mulf %81, %17 : vector<1x128xf32>
    %83 = arith.addf %79, %82 : vector<1x128xf32>
    %c3_42 = arith.constant 3 : index
    %c2_43 = arith.constant 2 : index
    %84 = memref.load %arg4[%c3_42, %c2_43] : memref<4x4xf32, #tpu.memory_space<smem>>
    %85 = vector.broadcast %84 : f32 to vector<1x128xf32>
    %86 = arith.mulf %85, %18 : vector<1x128xf32>
    %87 = arith.addf %83, %86 : vector<1x128xf32>
    %c3_44 = arith.constant 3 : index
    %c3_45 = arith.constant 3 : index
    %88 = memref.load %arg4[%c3_44, %c3_45] : memref<4x4xf32, #tpu.memory_space<smem>>
    %89 = vector.broadcast %88 : f32 to vector<1x128xf32>
    %90 = arith.mulf %89, %19 : vector<1x128xf32>
    %91 = arith.addf %87, %90 : vector<1x128xf32>
    %92 = arith.index_cast %arg1 : i32 to index
    %c3_46 = arith.constant 3 : index
    %93 = memref.load %arg3[%92, %c3_46] : memref<4x4xf32, #tpu.memory_space<smem>>
    %94 = vector.broadcast %93 : f32 to vector<1x128xf32>
    %95 = arith.addf %91, %94 : vector<1x128xf32>
    %c4_47 = arith.constant 4 : index
    %c0_48 = arith.constant 0 : index
    %96 = vector.load %arg8[%c4_47, %c0_48] : memref<8x128xf32, #tpu.memory_space<vmem>>, vector<1x128xf32>
    %c5_49 = arith.constant 5 : index
    %c0_50 = arith.constant 0 : index
    %97 = vector.load %arg8[%c5_49, %c0_50] : memref<8x128xf32, #tpu.memory_space<vmem>>, vector<1x128xf32>
    %c6 = arith.constant 6 : index
    %c0_51 = arith.constant 0 : index
    %98 = vector.load %arg8[%c6, %c0_51] : memref<8x128xf32, #tpu.memory_space<vmem>>, vector<1x128xf32>
    %c7 = arith.constant 7 : index
    %c0_52 = arith.constant 0 : index
    %99 = vector.load %arg8[%c7, %c0_52] : memref<8x128xf32, #tpu.memory_space<vmem>>, vector<1x128xf32>
    %c0_53 = arith.constant 0 : index
    %c0_54 = arith.constant 0 : index
    %100 = memref.load %arg4[%c0_53, %c0_54] : memref<4x4xf32, #tpu.memory_space<smem>>
    %101 = vector.broadcast %100 : f32 to vector<1x128xf32>
    %102 = arith.mulf %101, %96 : vector<1x128xf32>
    %c0_55 = arith.constant 0 : index
    %c1_56 = arith.constant 1 : index
    %103 = memref.load %arg4[%c0_55, %c1_56] : memref<4x4xf32, #tpu.memory_space<smem>>
    %104 = vector.broadcast %103 : f32 to vector<1x128xf32>
    %105 = arith.mulf %104, %97 : vector<1x128xf32>
    %106 = arith.addf %102, %105 : vector<1x128xf32>
    %c0_57 = arith.constant 0 : index
    %c2_58 = arith.constant 2 : index
    %107 = memref.load %arg4[%c0_57, %c2_58] : memref<4x4xf32, #tpu.memory_space<smem>>
    %108 = vector.broadcast %107 : f32 to vector<1x128xf32>
    %109 = arith.mulf %108, %98 : vector<1x128xf32>
    %110 = arith.addf %106, %109 : vector<1x128xf32>
    %c0_59 = arith.constant 0 : index
    %c3_60 = arith.constant 3 : index
    %111 = memref.load %arg4[%c0_59, %c3_60] : memref<4x4xf32, #tpu.memory_space<smem>>
    %112 = vector.broadcast %111 : f32 to vector<1x128xf32>
    %113 = arith.mulf %112, %99 : vector<1x128xf32>
    %114 = arith.addf %110, %113 : vector<1x128xf32>
    %115 = arith.index_cast %arg1 : i32 to index
    %c0_61 = arith.constant 0 : index
    %116 = memref.load %arg3[%115, %c0_61] : memref<4x4xf32, #tpu.memory_space<smem>>
    %117 = vector.broadcast %116 : f32 to vector<1x128xf32>
    %118 = arith.addf %114, %117 : vector<1x128xf32>
    %c1_62 = arith.constant 1 : index
    %c0_63 = arith.constant 0 : index
    %119 = memref.load %arg4[%c1_62, %c0_63] : memref<4x4xf32, #tpu.memory_space<smem>>
    %120 = vector.broadcast %119 : f32 to vector<1x128xf32>
    %121 = arith.mulf %120, %96 : vector<1x128xf32>
    %c1_64 = arith.constant 1 : index
    %c1_65 = arith.constant 1 : index
    %122 = memref.load %arg4[%c1_64, %c1_65] : memref<4x4xf32, #tpu.memory_space<smem>>
    %123 = vector.broadcast %122 : f32 to vector<1x128xf32>
    %124 = arith.mulf %123, %97 : vector<1x128xf32>
    %125 = arith.addf %121, %124 : vector<1x128xf32>
    %c1_66 = arith.constant 1 : index
    %c2_67 = arith.constant 2 : index
    %126 = memref.load %arg4[%c1_66, %c2_67] : memref<4x4xf32, #tpu.memory_space<smem>>
    %127 = vector.broadcast %126 : f32 to vector<1x128xf32>
    %128 = arith.mulf %127, %98 : vector<1x128xf32>
    %129 = arith.addf %125, %128 : vector<1x128xf32>
    %c1_68 = arith.constant 1 : index
    %c3_69 = arith.constant 3 : index
    %130 = memref.load %arg4[%c1_68, %c3_69] : memref<4x4xf32, #tpu.memory_space<smem>>
    %131 = vector.broadcast %130 : f32 to vector<1x128xf32>
    %132 = arith.mulf %131, %99 : vector<1x128xf32>
    %133 = arith.addf %129, %132 : vector<1x128xf32>
    %134 = arith.index_cast %arg1 : i32 to index
    %c1_70 = arith.constant 1 : index
    %135 = memref.load %arg3[%134, %c1_70] : memref<4x4xf32, #tpu.memory_space<smem>>
    %136 = vector.broadcast %135 : f32 to vector<1x128xf32>
    %137 = arith.addf %133, %136 : vector<1x128xf32>
    %c2_71 = arith.constant 2 : index
    %c0_72 = arith.constant 0 : index
    %138 = memref.load %arg4[%c2_71, %c0_72] : memref<4x4xf32, #tpu.memory_space<smem>>
    %139 = vector.broadcast %138 : f32 to vector<1x128xf32>
    %140 = arith.mulf %139, %96 : vector<1x128xf32>
    %c2_73 = arith.constant 2 : index
    %c1_74 = arith.constant 1 : index
    %141 = memref.load %arg4[%c2_73, %c1_74] : memref<4x4xf32, #tpu.memory_space<smem>>
    %142 = vector.broadcast %141 : f32 to vector<1x128xf32>
    %143 = arith.mulf %142, %97 : vector<1x128xf32>
    %144 = arith.addf %140, %143 : vector<1x128xf32>
    %c2_75 = arith.constant 2 : index
    %c2_76 = arith.constant 2 : index
    %145 = memref.load %arg4[%c2_75, %c2_76] : memref<4x4xf32, #tpu.memory_space<smem>>
    %146 = vector.broadcast %145 : f32 to vector<1x128xf32>
    %147 = arith.mulf %146, %98 : vector<1x128xf32>
    %148 = arith.addf %144, %147 : vector<1x128xf32>
    %c2_77 = arith.constant 2 : index
    %c3_78 = arith.constant 3 : index
    %149 = memref.load %arg4[%c2_77, %c3_78] : memref<4x4xf32, #tpu.memory_space<smem>>
    %150 = vector.broadcast %149 : f32 to vector<1x128xf32>
    %151 = arith.mulf %150, %99 : vector<1x128xf32>
    %152 = arith.addf %148, %151 : vector<1x128xf32>
    %153 = arith.index_cast %arg1 : i32 to index
    %c2_79 = arith.constant 2 : index
    %154 = memref.load %arg3[%153, %c2_79] : memref<4x4xf32, #tpu.memory_space<smem>>
    %155 = vector.broadcast %154 : f32 to vector<1x128xf32>
    %156 = arith.addf %152, %155 : vector<1x128xf32>
    %c3_80 = arith.constant 3 : index
    %c0_81 = arith.constant 0 : index
    %157 = memref.load %arg4[%c3_80, %c0_81] : memref<4x4xf32, #tpu.memory_space<smem>>
    %158 = vector.broadcast %157 : f32 to vector<1x128xf32>
    %159 = arith.mulf %158, %96 : vector<1x128xf32>
    %c3_82 = arith.constant 3 : index
    %c1_83 = arith.constant 1 : index
    %160 = memref.load %arg4[%c3_82, %c1_83] : memref<4x4xf32, #tpu.memory_space<smem>>
    %161 = vector.broadcast %160 : f32 to vector<1x128xf32>
    %162 = arith.mulf %161, %97 : vector<1x128xf32>
    %163 = arith.addf %159, %162 : vector<1x128xf32>
    %c3_84 = arith.constant 3 : index
    %c2_85 = arith.constant 2 : index
    %164 = memref.load %arg4[%c3_84, %c2_85] : memref<4x4xf32, #tpu.memory_space<smem>>
    %165 = vector.broadcast %164 : f32 to vector<1x128xf32>
    %166 = arith.mulf %165, %98 : vector<1x128xf32>
    %167 = arith.addf %163, %166 : vector<1x128xf32>
    %c3_86 = arith.constant 3 : index
    %c3_87 = arith.constant 3 : index
    %168 = memref.load %arg4[%c3_86, %c3_87] : memref<4x4xf32, #tpu.memory_space<smem>>
    %169 = vector.broadcast %168 : f32 to vector<1x128xf32>
    %170 = arith.mulf %169, %99 : vector<1x128xf32>
    %171 = arith.addf %167, %170 : vector<1x128xf32>
    %172 = arith.index_cast %arg1 : i32 to index
    %c3_88 = arith.constant 3 : index
    %173 = memref.load %arg3[%172, %c3_88] : memref<4x4xf32, #tpu.memory_space<smem>>
    %174 = vector.broadcast %173 : f32 to vector<1x128xf32>
    %175 = arith.addf %171, %174 : vector<1x128xf32>
    %176 = tpu.concatenate %38, %57, %76, %95, %118, %137, %156, %175 in 0 : vector<1x128xf32>, vector<1x128xf32>, vector<1x128xf32>, vector<1x128xf32>, vector<1x128xf32>, vector<1x128xf32>, vector<1x128xf32>, vector<1x128xf32> -> vector<8x128xf32>
    %177 = vector.broadcast %10 : f32 to vector<8x128xf32>
    %178 = arith.mulf %177, %176 : vector<8x128xf32>
    %179 = arith.subf %15, %178 : vector<8x128xf32>
    %180 = vector.broadcast %8 : f32 to vector<8x128xf32>
    %181 = arith.mulf %179, %180 : vector<8x128xf32>
    %cst = arith.constant -1.000000e+00 : f32
    %cst_89 = arith.constant 1.000000e+00 : f32
    %182 = vector.broadcast %cst : f32 to vector<8x128xf32>
    %183 = arith.maximumf %182, %181 : vector<8x128xf32>
    %184 = vector.broadcast %cst_89 : f32 to vector<8x128xf32>
    %185 = arith.minimumf %184, %183 : vector<8x128xf32>
    %186 = vector.broadcast %6 : f32 to vector<8x128xf32>
    %187 = arith.mulf %186, %185 : vector<8x128xf32>
    %188 = vector.broadcast %4 : f32 to vector<8x128xf32>
    %189 = arith.mulf %188, %15 : vector<8x128xf32>
    %190 = arith.addf %187, %189 : vector<8x128xf32>
    %191 = vector.broadcast %12 : f32 to vector<8x128xf32>
    %192 = arith.mulf %191, %190 : vector<8x128xf32>
    %c0_90 = arith.constant 0 : index
    %c0_91 = arith.constant 0 : index
    %c0_92 = arith.constant 0 : index
    %193 = vector.load %arg6[%c0_90, %c0_91, %c0_92] : memref<1x8x128xf32, #tpu.memory_space<vmem>>, vector<1x8x128xf32>
    %194 = vector.shape_cast %193 : vector<1x8x128xf32> to vector<8x128xf32>
    %195 = vector.broadcast %14 : f32 to vector<8x128xf32>
    %196 = arith.mulf %195, %194 : vector<8x128xf32>
    %197 = arith.addf %192, %196 : vector<8x128xf32>
    %c0_93 = arith.constant 0 : index
    %c0_94 = arith.constant 0 : index
    %198 = vector.load %arg8[%c0_93, %c0_94] : memref<8x128xf32, #tpu.memory_space<vmem>>, vector<8x128xf32>
    tpu.vector_store %arg8[%c0_93, %c0_94], %197 {strides = array<i32>} : memref<8x128xf32, #tpu.memory_space<vmem>>, vector<8x128xf32>,
    %c3_i32 = arith.constant 3 : i32
    %199 = arith.cmpi eq, %arg1, %c3_i32 : i32
    %200 = arith.extui %199 : i1 to i32
    %c0_i32_95 = arith.constant 0 : i32
    %201 = arith.cmpi ne, %200, %c0_i32_95 : i32
    scf.if %201 {
      %cst_96 = arith.constant 5.000000e-01 : f32
      %202 = vector.broadcast %cst_96 : f32 to vector<8x128xf32>
      %203 = arith.mulf %197, %202 : vector<8x128xf32>
      %cst_97 = arith.constant 5.000000e-01 : f32
      %204 = vector.broadcast %cst_97 : f32 to vector<8x128xf32>
      %205 = arith.addf %203, %204 : vector<8x128xf32>
      %cst_98 = arith.constant 0.000000e+00 : f32
      %cst_99 = arith.constant 1.000000e+00 : f32
      %206 = vector.broadcast %cst_98 : f32 to vector<8x128xf32>
      %207 = arith.maximumf %206, %205 : vector<8x128xf32>
      %208 = vector.broadcast %cst_99 : f32 to vector<8x128xf32>
      %209 = arith.minimumf %208, %207 : vector<8x128xf32>
      %c0_100 = arith.constant 0 : index
      %c0_101 = arith.constant 0 : index
      %210 = vector.load %arg7[%c0_100, %c0_101] : memref<8x128xf32, #tpu.memory_space<vmem>>, vector<8x128xf32>
      tpu.vector_store %arg7[%c0_100, %c0_101], %209 {strides = array<i32>} : memref<8x128xf32, #tpu.memory_space<vmem>>, vector<8x128xf32>,
    } else {
    }
    return
  }
  func.func @transform_0(%arg0: i32, %arg1: i32) -> (i32, i32) {
    %c0_i32 = arith.constant 0 : i32
    %c0_i32_0 = arith.constant 0 : i32
    %c0_i32_1 = arith.constant 0 : i32
    return %c0_i32, %c0_i32_0 : i32, i32
  }
  func.func @transform_1(%arg0: i32, %arg1: i32) -> (i32, i32) {
    %c0_i32 = arith.constant 0 : i32
    %c0_i32_0 = arith.constant 0 : i32
    %c0_i32_1 = arith.constant 0 : i32
    return %c0_i32, %c0_i32_0 : i32, i32
  }
  func.func @transform_2(%arg0: i32, %arg1: i32) -> (i32, i32) {
    %c0_i32 = arith.constant 0 : i32
    %c0_i32_0 = arith.constant 0 : i32
    %c0_i32_1 = arith.constant 0 : i32
    return %c0_i32, %c0_i32_0 : i32, i32
  }
  func.func @transform_3(%arg0: i32, %arg1: i32) -> (i32, i32) {
    %c0_i32 = arith.constant 0 : i32
    %c0_i32_0 = arith.constant 0 : i32
    return %c0_i32, %arg0 : i32, i32
  }
  func.func @transform_4(%arg0: i32, %arg1: i32) -> (i32, i32, i32) {
    %c0_i32 = arith.constant 0 : i32
    %c0_i32_0 = arith.constant 0 : i32
    return %arg1, %c0_i32, %arg0 : i32, i32, i32
  }
  func.func @transform_5(%arg0: i32, %arg1: i32) -> (i32, i32) {
    %c0_i32 = arith.constant 0 : i32
    %c0_i32_0 = arith.constant 0 : i32
    return %c0_i32, %arg0 : i32, i32
  }
}

</mosaic_0001>

<bundles_post_ra>
// kernel: consistency_sample.1
= control target key start
LH: loop header
LB: loop body
LE: loop exit
PB: predicated region body
PF: predicated region fallthrough
CT: control target
= control target key end

     0   :  { %10 = vsyncpa [#allocation4], 0  ;;  %s1080_s0 = inlined_call_operand.vmem [shape: f32[4,6], index: 0, kind: input, shape index: {}]   ;;  %s1081_s1 = inlined_call_operand.vmem [shape: f32[4,4], index: 1, kind: input, shape index: {}]   ;;  %s1082_s2 = inlined_call_operand.vmem [shape: f32[4,4], index: 2, kind: input, shape index: {}]   ;;  %s1083_s3 = inlined_call_operand.vmem [shape: f32[8,256], index: 3, kind: input, shape index: {}]   ;;  %s1084_s4 = inlined_call_operand.vmem [shape: f32[4,8,256], index: 4, kind: input, shape index: {}]   ;;  %s1085_s5 = inlined_call_operand.vmem [shape: f32[8,256], index: 5, kind: output, shape index: {}]  }
   0x1   :  { %11 = vsyncpa [#allocation6], 0  ;;  %s843_s18 = smov 0   ;;  %s845_s19 = smov 0  }
   0x2   :  { %s847_s20 = smov 0   ;;  %s849_s21 = smov 0  }
   0x3   :  { %s851_s22 = smov 0  }
   0x4 LB: > { %s199_s25 = sshll.u32 %s1081_s1, 4  ;;  %s610_s26 = sadd.s32 4294967295, %s808_s22   ;;  %s808_s22 = sphi %s851_s22, %s17_s22   ;;  %s804_s21 = sphi %s849_s21, %s1092_s21   ;;  %s800_s20 = sphi %s847_s20, %s1091_s20   ;;  %s796_s19 = sphi %s845_s19, %s1090_s19   ;;  %s792_s18 = sphi %s843_s18, %s1089_s18   ;;  %s200_s25 = int_to_ptr.vmem [resolvable:$true] %s199_s25 }
   0x5   : > { %p612_p0 = scmp.ge.s32.totalorder %s808_s22, 1  ;;  %p177_p1 = scmp.lt.s32.totalorder %s808_s22, 9 }
   0x6   : > { %p874_p2 = scmp.eq.s32.totalorder %s610_s26, 0  ;;  %s26_s30 = sadd.s32 1, %s800_s20 }
   0x7   : > { %p878_p3 = pnand %p612_p0, %p177_p1  ;;  %p27_p6 = scmp.ge.s32.totalorder %s26_s30, 4 }
   0x8   : > { %s810_s6 = smov [#allocation5]   ;;  %s29_s7 = sadd.s32 1, %s804_s21 }
   0x9   : > { %p658_p4 = pneg %p878_p3  ;;  %s1094_s30 = smov (%p27_p6, %s26_s30), 0 }
   0xa   : > { %s189_s10 = sshll.u32 %s1080_s0, 4  ;;  %s1096_s7 = smov (!%p27_p6, %s29_s7), %s804_s21  ;;  %s190_s10 = int_to_ptr.vmem [resolvable:$true] %s189_s10 }
   0xb   : > { %p886_p5 = pnand %p874_p2, %p658_p4  ;;  %p31_p7 = scmp.ge.s32.totalorder %s1096_s7, 2 }
   0xc   : > { %s209_s13 = sshll.u32 %s1082_s2, 4  ;;  %s811_s14 = smov [#allocation3]   ;;  %s210_s13 = int_to_ptr.vmem [resolvable:$true] %s209_s13 }
   0xd   : > { %664 = dma.vmem_to_smem (!%p886_p5), %s200_s25, 64, %s810_s6, [#allocation6]  }
   0xe   : > { %661 = dma.vmem_to_smem (!%p886_p5), %s190_s10, 64, %s811_s14, [#allocation4]  }
   0xf   : > { %s1098_s7 = smov (%p31_p7, %s1096_s7), 0  ;;  %s812_s15 = smov [#allocation7]  }
  0x10   : > { %667 = dma.vmem_to_smem (!%p886_p5), %s210_s13, 64, %s812_s15, [#allocation6]  }
  0x11   : > { %240 = sbr.rel (%p878_p3) target bundleno = 105 (0x69), region = 40 }
  0x16   : > { %783 = dma.done.wait (%p874_p2), [#allocation4], 64  }
  0x17   : > { %785 = vsyncadd (%p874_p2), [#allocation4], 4294967232 }
  0x18   : > { %787 = dma.done.wait (%p874_p2), [#allocation6], 128  }
  0x19   : > { %789 = vsyncadd (%p874_p2), [#allocation6], 4294967168 }
  0x1a   : > { %257 = sfence }
  0x1b   : > { %p286_p8 = scmp.lt.s32.totalorder %s796_s19, 1  ;;  %p290_p9 = scmp.lt.s32.totalorder %s792_s18, 3 }
  0x1c   : > { %p625_p10 = scmp.ne.s32.totalorder %s792_s18, 0 }
  0x1d   : > { %s1100_s19 = smov (!%p286_p8, %s796_s19), 1 }
  0x1e   : > { %s291_s16 = scalar_select %p290_p9, %s792_s18, 3 }
  0x1f   : > { %s621_s17 = sshll.u32 %s1100_s19, 3  ;;  %305 = sbr.rel (%p625_p10) target bundleno = 38 (0x26), region = 56 }
  0x20   : > { %s289_s25 = scalar_lea.vmem %s1083_s3, %s621_s17  ;;  %s622_s26 = sshll.u32 %s291_s16, 1 }
  0x21   : > { %s295_s28 = sadd.s32 %s622_s26, %s1100_s19  ;;  %s929_s27 = scalar_lea.vmem %s1085_s5, %s621_s17 }
  0x22   : > { %s623_s8 = sshll.u32 %s295_s28, 3 }
  0x23   : > { %s934_s11 = scalar_lea.vmem %s1084_s4, %s623_s8 }
  0x24   : > { %v306_v0 = vld [vmem:[%s289_s25] sm:$0xff] }
  0x25   : > { %307 = vst [vmem:[#allocation2] sm:$0xff] %v306_v0 }
  0x26 PF: > { %s325_s12 = sld [smem:[#allocation7]]  ;;  %s938_s14 = sshll.u32 %s792_s18, 7  ;;  %vm454_vm0 = vcmask 1040384   ;;  %vm456_vm1 = vcmask 1041408   ;;  %vm458_vm2 = vcmask 1042432   ;;  %vm460_vm3 = vcmask 1043456  }
  0x27   : > { %s627_s19 = sld [smem:[#allocation7 + $0x1]]  ;;  %s310_s23 = sadd.s32 1, %s938_s14  ;;  %vm462_vm4 = vcmask 1044480   ;;  %vm464_vm5 = vcmask 1045504   ;;  %vm466_vm6 = vcmask 1046528  }
  0x28   : > { %s628_s13 = sld [smem:[#allocation7 + $0x2]]  ;;  %s312_s6 = sadd.s32 2, %s938_s14 }
  0x29   : > { %s940_s15 = sld [smem:[#allocation7 + $0x3]]  ;;  %p643_p11 = scmp.ne.s32.totalorder %s792_s18, 3 }
  0x2a   : > { %s943_s16 = sld [smem:[#allocation5 + %s938_s14]] }
  0x2b   : > { %s949_s17 = sld [smem:[#allocation7 + $0x80]] }
  0x2c   : > { %v945_v1 = vld [vmem:[#allocation2 + $0x4] sm:$0x1]  ;;  %v947_v2 = vld [vmem:[#allocation2] sm:$0x1]  ;;  %v951_v3 = vld [vmem:[#allocation2 + $0x5] sm:$0x1]  ;;  %v326_v4 = vstv %s325_s12 }
  0x2d   : > { %s954_s24 = sld [smem:[#allocation7 + $0x81]]  ;;  %v956_v5 = vld [vmem:[#allocation2 + $0x6] sm:$0x1]  ;;  %v958_v6 = vld [vmem:[#allocation2 + $0x1] sm:$0x1]  ;;  %v327_v7 = vmul.f32 %v326_v4, %v947_v2  ;;  %v329_v8 = vstv %s627_s19  ;;  %v401_v9 = vmul.f32 %v945_v1, %v326_v4 }
  0x2e   : > { %s961_s25 = sld [smem:[#allocation7 + $0x82]]  ;;  %v964_v10 = vld [vmem:[#allocation2 + $0x2] sm:$0x1]  ;;  %v330_v11 = vmul.f32 %v329_v8, %v958_v6  ;;  %v333_v12 = vstv %s628_s13  ;;  %v969_v13 = vld [vmem:[#allocation2 + $0x7] sm:$0x1]  ;;  %v402_v14 = vmul.f32 %v951_v3, %v329_v8 }
  0x2f   : > { %s967_s26 = sld [smem:[#allocation7 + $0x83]]  ;;  %v334_v15 = vmul.f32 %v333_v12, %v964_v10  ;;  %v337_v16 = vstv %s940_s15  ;;  %v404_v17 = vmul.f32 %v956_v5, %v333_v12  ;;  %v979_v18 = vld [vmem:[#allocation2 + $0x3] sm:$0x1]  ;;  %s314_s15 = sadd.s32 3, %s938_s14 }
  0x30   : > { %s976_s28 = sld [smem:[#allocation5 + %s310_s23]]  ;;  %v331_v19 = vadd.f32 %v330_v11, %v327_v7  ;;  %v403_v20 = vadd.f32 %v402_v14, %v401_v9  ;;  %v338_v21 = vmul.f32 %v337_v16, %v979_v18  ;;  %v406_v23 = vmul.f32 %v969_v13, %v337_v16 }
  0x31   : > { %s981_s29 = sld [smem:[#allocation7 + $0x100]]  ;;  %v344_v22 = vstv %s949_s17  ;;  %v341_v34 = vstv %s943_s16 }
  0x32   : > { %s986_s8 = sld [smem:[#allocation7 + $0x101]]  ;;  %v335_v24 = vadd.f32 %v334_v15, %v331_v19  ;;  %v345_v25 = vmul.f32 %v344_v22, %v947_v2  ;;  %v405_v27 = vadd.f32 %v404_v17, %v403_v20  ;;  %v409_v30 = vmul.f32 %v945_v1, %v344_v22 }
  0x33   : > { %v347_v26 = vstv %s954_s24  ;;  %s991_s9 = sld [smem:[#allocation7 + $0x102]] }
  0x34   : > { %v348_v28 = vmul.f32 %v347_v26, %v958_v6  ;;  %v351_v29 = vstv %s961_s25  ;;  %s995_s10 = sld [smem:[#allocation7 + $0x103]]  ;;  %v410_v31 = vmul.f32 %v951_v3, %v347_v26  ;;  %v339_v37 = vadd.f32 %v338_v21, %v335_v24 }
  0x35   : > { %v352_v32 = vmul.f32 %v351_v29, %v964_v10  ;;  %v355_v33 = vstv %s967_s26  ;;  %s1003_s12 = sld [smem:[#allocation5 + %s312_s6]]  ;;  %v412_v40 = vmul.f32 %v956_v5, %v351_v29  ;;  %v407_v44 = vadd.f32 %v406_v23, %v405_v27 }
  0x36   : > { %v349_v35 = vadd.f32 %v348_v28, %v345_v25  ;;  %v356_v36 = vmul.f32 %v355_v33, %v979_v18  ;;  %s1007_s19 = sld [smem:[#allocation7 + $0x180]]  ;;  %v411_v39 = vadd.f32 %v410_v31, %v409_v30  ;;  %v359_v45 = vstv %s976_s28 }
  0x37   : > { %v362_v38 = vstv %s981_s29  ;;  %s1010_s13 = sld [smem:[#allocation7 + $0x181]]  ;;  %v414_v56 = vmul.f32 %v969_v13, %v355_v33  ;;  %v342_v16 = vadd.f32 %v341_v34, %v339_v37  ;;  %v408_v24 = vadd.f32 %v407_v44, %v341_v34  ;;  %s318_s29 = sadd.s32 5, %s938_s14 }
  0x38   : > { %v353_v41 = vadd.f32 %v352_v32, %v349_v35  ;;  %v363_v42 = vmul.f32 %v362_v38, %v947_v2  ;;  %v365_v43 = vstv %s986_s8  ;;  %s1016_s16 = sld [smem:[#allocation7 + $0x182]]  ;;  %v417_v48 = vmul.f32 %v945_v1, %v362_v38 }
  0x39   : > { %v366_v46 = vmul.f32 %v365_v43, %v958_v6  ;;  %v369_v47 = vstv %s991_s9  ;;  %s1021_s17 = sld [smem:[#allocation7 + $0x183]]  ;;  %v418_v52 = vmul.f32 %v951_v3, %v365_v43  ;;  %v413_v55 = vadd.f32 %v412_v40, %v411_v39  ;;  %v320_v43 = vld [vmem:[#allocation2] sm:$0xff] }
  0x3a   : > { %v357_v49 = vadd.f32 %v356_v36, %v353_v41  ;;  %v370_v50 = vmul.f32 %v369_v47, %v964_v10  ;;  %v373_v51 = vstv %s995_s10  ;;  %s1030_s24 = sld [smem:[#allocation5 + %s314_s15]]  ;;  %v420_v60 = vmul.f32 %v956_v5, %v369_v47 }
  0x3b   : > { %v367_v53 = vadd.f32 %v366_v46, %v363_v42  ;;  %v374_v54 = vmul.f32 %v373_v51, %v979_v18  ;;  %v377_v57 = vstv %s1003_s12  ;;  %v419_v59 = vadd.f32 %v418_v52, %v417_v48  ;;  %s1051_s25 = sld [smem:[#allocation3 + %s314_s15]] }
  0x3c   : > { %v380_v58 = vstv %s1007_s19  ;;  %v360_v61 = vadd.f32 %v359_v45, %v357_v49  ;;  %v422_v9 = vmul.f32 %v969_v13, %v373_v51  ;;  %v443_v32 = vrot.slane %v408_v24, 4  ;;  %s313_s26 = sld [smem:[#allocation3 + %s312_s6]]  ;;  %s316_s6 = sadd.s32 4, %s938_s14 }
  0x3d   : > { %v371_v62 = vadd.f32 %v370_v50, %v367_v53  ;;  %v381_v63 = vmul.f32 %v380_v58, %v947_v2  ;;  %v383_v0 = vstv %s1010_s13  ;;  %v421_v8 = vadd.f32 %v420_v60, %v419_v59  ;;  %s309_s28 = sld [smem:[#allocation3 + %s938_s14]]  ;;  %v482_v53 = vld [vmem:[%s934_s11] sm:$0xff] }
  0x3e   : > { %v384_v4 = vmul.f32 %v383_v0, %v958_v6  ;;  %v387_v7 = vstv %s1016_s16  ;;  %v425_v15 = vmul.f32 %v945_v1, %v380_v58  ;;  %v415_v2 = vadd.f32 %v414_v56, %v413_v55  ;;  %s311_s8 = sld [smem:[#allocation3 + %s310_s23]] }
  0x3f   : > { %v375_v11 = vadd.f32 %v374_v54, %v371_v62  ;;  %v388_v12 = vmul.f32 %v387_v7, %v964_v10  ;;  %v391_v14 = vstv %s1021_s17  ;;  %v423_v21 = vadd.f32 %v422_v9, %v421_v8  ;;  %s319_s9 = sld [smem:[#allocation3 + %s318_s29]] }
  0x40   : > { %v385_v17 = vadd.f32 %v384_v4, %v381_v63  ;;  %v392_v19 = vmul.f32 %v391_v14, %v979_v18  ;;  %v426_v6 = vmul.f32 %v951_v3, %v383_v0  ;;  %v428_v22 = vmul.f32 %v956_v5, %v387_v7  ;;  %s317_s10 = sld [smem:[#allocation3 + %s316_s6]] }
  0x41   : > { %v378_v20 = vadd.f32 %v377_v57, %v375_v11  ;;  %v434_v25 = vrot.slane %v360_v61, 7  ;;  %v395_v26 = vstv %s1030_s24  ;;  %v430_v1 = vmul.f32 %v969_v13, %v391_v14 }
  0x42   : > { %v389_v23 = vadd.f32 %v388_v12, %v385_v17  ;;  %v427_v10 = vadd.f32 %v426_v6, %v425_v15  ;;  %v416_v28 = vadd.f32 %v415_v2, %v359_v45  ;;  %v424_v3 = vadd.f32 %v423_v21, %v377_v57 }
  0x43   : > { %v437_v27 = vrot.slane %v378_v20, 6  ;;  %v455_v29 = vsel %vm454_vm0, %v342_v16, %v434_v25  ;;  %v468_v41 = vstv %s1051_s25  ;;  %v471_v46 = vstv %s313_s26 }
  0x44   : > { %v393_v18 = vadd.f32 %v392_v19, %v389_v23  ;;  %v429_v5 = vadd.f32 %v428_v22, %v427_v10  ;;  %v446_v34 = vrot.slane %v416_v28, 3  ;;  %v449_v36 = vrot.slane %v424_v3, 2 }
  0x45   : > { %v457_v33 = vsel %vm456_vm1, %v455_v29, %v437_v27  ;;  %v477_v48 = vstv %s309_s28  ;;  %v475_v50 = vstv %s311_s8  ;;  %v483_v54 = vstv %s319_s9 }
  0x46   : > { %v396_v30 = vadd.f32 %v395_v26, %v393_v18  ;;  %v431_v31 = vadd.f32 %v430_v1, %v429_v5  ;;  %v478_v52 = vmul.f32 %v477_v48, %v320_v43  ;;  %v480_v56 = vstv %s317_s10 }
  0x47   : > { %v484_v58 = vmul.f32 %v483_v54, %v482_v53 }
  0x48   : > { %v440_v13 = vrot.slane %v396_v30, 5  ;;  %v432_v35 = vadd.f32 %v431_v31, %v395_v26 }
  0x4a   : > { %v459_v37 = vsel %vm458_vm2, %v457_v33, %v440_v13  ;;  %v452_v38 = vrot.slane %v432_v35, 1 }
  0x4b   : > { %v461_v39 = vsel %vm460_vm3, %v459_v37, %v443_v32 }
  0x4c   : > { %v463_v40 = vsel %vm462_vm4, %v461_v39, %v446_v34 }
  0x4d   : > { %v465_v42 = vsel %vm464_vm5, %v463_v40, %v449_v36 }
  0x4e   : > { %v467_v44 = vsel %vm466_vm6, %v465_v42, %v452_v38 }
  0x4f   : > { %v469_v45 = vmul.f32 %v468_v41, %v467_v44 }
  0x51   : > { %v470_v47 = vsub.f32 %v320_v43, %v469_v45 }
  0x53   : > { %v472_v49 = vmul.f32 %v471_v46, %v470_v47 }
  0x55   : > { %v642_v51 = vclamps-f32 %v472_v49, 1.0 }
  0x57   : > { %v476_v55 = vmul.f32 %v642_v51, %v475_v50 }
  0x59   : > { %v479_v57 = vadd.f32 %v478_v52, %v476_v55 }
  0x5b   : > { %v481_v59 = vmul.f32 %v480_v56, %v479_v57  ;;  %490 = sbr.rel (%p643_p11) target bundleno = 105 (0x69), region = 60 }
  0x5d   : > { %v485_v60 = vadd.f32 %v484_v58, %v481_v59 }
  0x5f   : > { %486 = vst [vmem:[#allocation2] sm:$0xff] %v485_v60 }
  0x60   : > { %v491_v61 = vmul.f32 0.5, %v485_v60 }
  0x62   : > { %v492_v62 = vadd.f32 0.5, %v491_v61 }
  0x64   : > { %v493_v63 = vmax.f32 %v492_v62, 0.0 }
  0x66   : > { %v494_v0 = vmin.f32 %v493_v63, 1.0 }
  0x68   : > { %495 = vst [vmem:[%s929_s27] sm:$0xff] %v494_v0 }
  0x69 PF: > { %s17_s22 = sadd.s32 1, %s808_s22   ;;  %s1089_s18 = smov %s800_s20 }
  0x6a   : > { %p14_p12 = scmp.ge.s32.totalorder %s17_s22, 10   ;;  %s1090_s19 = smov %s804_s21 }
  0x6b   : > { %s1091_s20 = smov %s1094_s30  ;;  %s1092_s21 = smov %s1098_s7 }
  0x6c   :  { %16 = sbr.rel (!%p14_p12) target bundleno = 4 (0x4), region = 94 }
  0x71   :  { %515 = vsyncpa [#allocation4], 1 }
  0x72   :  { %517 = vsyncpa [#allocation4 + $0x1], 1 }
  0x73   :  { %518 = vsyncpa [#allocation6], 1 }

</bundles_post_ra>
